<compile_context>
chip_gen: v6e
topology: v6e:2x2x1
jax: 0.10.0
libtpu: 0.0.40
codegen_flags: <defaults>
</compile_context>

<pallas_src>
import numpy as np
import jax
import jax.numpy as jnp
from jax.experimental import pallas as pl
from jax.experimental.pallas import tpu as pltpu


_LANE = 128            # lane width (last dim of a vreg)
_MAX_FLAT_COLS = 8192  # cap on the column width used when re-factorizing a flat waveform


def _identity_copy_kernel(x_ref, o_ref):
    # AudioToTensor performs no arithmetic on the waveform: pure passthrough.
    o_ref[...] = x_ref[...]


def _vmem_capacity_bytes():
    """Physical VMEM of the current chip; conservative fallback if unavailable."""
    try:
        info = pltpu.get_tpu_info()
        cap = getattr(info, "vmem_capacity_bytes", None)
        if cap:
            return int(cap)
    except Exception:
        pass
    return 64 * 1024 * 1024  # v7x per-TensorCore VMEM (smallest current part)


def _block_budget_and_vmem_limit():
    """Per-block byte budget and the scoped-VMEM limit to request.

    in + out, each double-buffered => peak ~= 4x one block; keep ~4x extra headroom
    so v7x (64 MiB physical) never gets close to OOM while v5e/v6e (128 MiB) get the
    larger 8 MiB blocks that sit at ~85% of the measured copy roofline.
    """
    vmem = _vmem_capacity_bytes()
    budget = int(min(8 * 1024 * 1024, vmem // 16))
    budget = max(budget, 1 * 1024 * 1024)
    vmem_limit = int(min(vmem // 2, max(6 * budget, 32 * 1024 * 1024)))
    return budget, vmem_limit


def _sublane_multiple(itemsize):
    """Row-tile alignment so packed dtypes keep their native sublane layout."""
    return max(8, 32 // max(1, itemsize))  # f32 -> 8, bf16 -> 16, int8/fp8 -> 32


def _as_2d_lane_dense(x):
    """Present the data as a (rows, cols) slab with cols a multiple of 128 when the
    element count allows (unmasked stores, contiguous DMA); falls back to the natural
    (prod(leading), last) layout otherwise (masked trailing lanes, still correct)."""
    total = int(x.size)
    last = int(x.shape[-1]) if x.ndim else total
    if last % _LANE == 0 and (x.ndim > 1 or last <= _MAX_FLAT_COLS):
        return x.reshape(-1, last)
    if total % _LANE == 0:
        cols = _LANE
        while cols * 2 <= _MAX_FLAT_COLS and total % (cols * 2) == 0:
            cols *= 2
        return x.reshape(-1, cols)
    if x.ndim <= 1:
        return x.reshape(1, total)
    return x.reshape(-1, last)


def _choose_tiles(rows, cols, itemsize, budget, sub):
    """Pick (row_tile, col_tile) with row_tile*col_tile*itemsize <= budget."""
    r = min(rows, sub)
    # Lane (last) axis: full width if an r-row slab fits the budget, otherwise tile
    # in multiples of 128 lanes (keeps long 1-D waveforms inside VMEM).
    if cols * itemsize * r <= budget:
        col_tile = cols
    else:
        col_tile = max(_LANE, (budget // (r * itemsize * _LANE)) * _LANE)

    # Sublane (second-to-last) axis.
    row_tile = min(rows, max(1, budget // (col_tile * itemsize)))
    # Guarantee >= 2 grid steps over rows when the batch is big enough so megacore
    # parts (v7x: 2 TensorCores) can shard the work.
    if col_tile == cols and rows >= 2 * sub:
        row_tile = min(row_tile, -(-rows // 2))
    if row_tile < rows:
        # Partial row tiling must be a multiple of the sublane packing.
        row_tile = max(sub, (row_tile // sub) * sub)
        if row_tile > rows:
            row_tile = rows
    return int(row_tile), int(col_tile)


def _to_tensor_pallas(wav):
    """Identity copy of `wav` through a Pallas kernel (JAX analogue of torch.from_numpy)."""
    x = jnp.asarray(wav)
    orig_shape = x.shape
    if x.size == 0 or x.ndim == 0:
        return x  # nothing for the kernel to do

    x2 = _as_2d_lane_dense(x)
    rows, cols = int(x2.shape[0]), int(x2.shape[1])
    itemsize = x2.dtype.itemsize

    budget, vmem_limit = _block_budget_and_vmem_limit()
    sub = _sublane_multiple(itemsize)
    row_tile, col_tile = _choose_tiles(rows, cols, itemsize, budget, sub)

    grid = (pl.cdiv(rows, row_tile), pl.cdiv(cols, col_tile))

    out = pl.pallas_call(
        _identity_copy_kernel,
        out_shape=jax.ShapeDtypeStruct((rows, cols), x2.dtype),
        grid=grid,
        in_specs=[pl.BlockSpec((row_tile, col_tile), lambda i, j: (i, j))],
        out_specs=pl.BlockSpec((row_tile, col_tile), lambda i, j: (i, j)),
        compiler_params=pltpu.CompilerParams(
            dimension_semantics=("parallel", "parallel"),
            vmem_limit_bytes=vmem_limit,
        ),
        cost_estimate=pl.CostEstimate(
            flops=0,
            transcendentals=0,
            bytes_accessed=2 * rows * cols * itemsize,
        ),
    )(x2)

    return out.reshape(orig_shape)


def audio_to_tensor(foreground_wav, background_wav):
    """Forward pass of AudioToTensor: returns (foreground_tensor, background_tensor|None)."""
    # TODO(synk): torch.from_numpy's zero-copy host aliasing has no TPU equivalent;
    # the conversion here is jnp.asarray (host->device) + a tiled identity Pallas copy.
    if background_wav is None:
        return (_to_tensor_pallas(foreground_wav), None)
    return (_to_tensor_pallas(foreground_wav), _to_tensor_pallas(background_wav))


if __name__ == "__main__":
    key = jax.random.PRNGKey(0)
    k_fg, k_bg = jax.random.split(key)
    B, N = 2, 256

    # AudioToTensor receives numpy waveforms (the reference calls torch.from_numpy).
    foreground_wav = np.asarray(jax.random.normal(k_fg, (B, N), dtype=jnp.float32))
    background_wav = np.asarray(jax.random.normal(k_bg, (B, N), dtype=jnp.float32))

    # Case 1: both foreground and background provided.
    fg_t, bg_t = audio_to_tensor(foreground_wav, background_wav)
    fg_t = jax.block_until_ready(fg_t)
    bg_t = jax.block_until_ready(bg_t)
    assert fg_t.shape == (B, N) and bg_t.shape == (B, N)
    assert fg_t.dtype == jnp.float32 and bg_t.dtype == jnp.float32
    np.testing.assert_array_equal(np.asarray(fg_t), foreground_wav)
    np.testing.assert_array_equal(np.asarray(bg_t), background_wav)

    # Case 2: background is None -> (foreground_tensor, None).
    fg_only, none_bg = audio_to_tensor(foreground_wav, None)
    fg_only = jax.block_until_ready(fg_only)
    assert none_bg is None
    np.testing.assert_array_equal(np.asarray(fg_only), foreground_wav)

    print("KERNEL_OK")
</pallas_src>

<mosaic_0001>
module attributes {stable_mosaic.version = 11 : i64} {
  func.func @_identity_copy_kernel(%arg0: i32, %arg1: i32, %arg2: memref<2x256xf32, #tpu.memory_space<vmem>>, %arg3: memref<2x256xf32, #tpu.memory_space<vmem>>) attributes {dimension_semantics = [#tpu.dimension_semantics<parallel>, #tpu.dimension_semantics<parallel>], iteration_bounds = array<i64: 1, 1>, scalar_prefetch = 0 : i64, scratch_operands = 0 : i64, tpu.core_type = #tpu.core_type<tc>, window_params = [{transform_indices = @transform_0, window_bounds = array<i64: 2, 256>}, {transform_indices = @transform_1, window_bounds = array<i64: 2, 256>}]} {
    %c0 = arith.constant 0 : index
    %c0_0 = arith.constant 0 : index
    %0 = vector.load %arg2[%c0, %c0_0] : memref<2x256xf32, #tpu.memory_space<vmem>>, vector<2x256xf32>
    %c0_1 = arith.constant 0 : index
    %c0_2 = arith.constant 0 : index
    %1 = vector.load %arg3[%c0_1, %c0_2] : memref<2x256xf32, #tpu.memory_space<vmem>>, vector<2x256xf32>
    tpu.vector_store %arg3[%c0_1, %c0_2], %0 {strides = array<i32>} : memref<2x256xf32, #tpu.memory_space<vmem>>, vector<2x256xf32>,
    return
  }
  func.func @transform_0(%arg0: i32, %arg1: i32) -> (i32, i32) {
    %c0_i32 = arith.constant 0 : i32
    return %arg0, %arg1 : i32, i32
  }
  func.func @transform_1(%arg0: i32, %arg1: i32) -> (i32, i32) {
    %c0_i32 = arith.constant 0 : i32
    return %arg0, %arg1 : i32, i32
  }
}

</mosaic_0001>

<bundles_post_ra>
// kernel: tpu_custom_call.1
= control target key start
LH: loop header
LB: loop body
LE: loop exit
PB: predicated region body
PF: predicated region fallthrough
CT: control target
= control target key end

     0   :  { %6 = vsyncpa [#allocation3], 0  ;;  %s102_s0 = inlined_call_operand.hbm [shape: f32[2,256], index: 0, kind: input, shape index: {}]   ;;  %s103_s1 = inlined_call_operand.hbm [shape: f32[2,256], index: 1, kind: output, shape index: {}]  }
   0x1   :  { %7 = vsyncpa [#allocation4], 0  ;;  %s84_s6 = smov [#allocation2]  }
   0x2   :  { %s14_s7 = sshll.u32 %s84_s6, 4  ;;  %s15_s7 = int_to_ptr.vmem [resolvable:$true] %s14_s7 }
   0x3   :  { %s48_s8 = scalar_lea.vmem %s15_s7, 64  ;;  %p53_p1 = scmp.lt.s32.totalorder %s15_s7, %s15_s7 }
   0x4   :  { %p49_p0 = scmp.ne.s32.totalorder %s15_s7, %s48_s8  ;;  %p54_p2 = scmp.lt.s32.totalorder %s48_s8, %s48_s8 }
   0x6   :  { %p55_p3 = por %p54_p2, %p53_p1 }
   0x8   :  { %p56_p4 = pnand %p55_p3, %p49_p0 }
   0xa   :  { %59 = shalt.err (!%p56_p4)
}
   0xb   :  { %17 = dma.hbm_to_vmem [thread:$0]  %s102_s0, 64, %s15_s7, [#allocation3]  }
   0xc   :  { %80 = dma.done.wait [#allocation3], 64  }
   0xd   :  { %81 = vsyncadd [#allocation3], 4294967232  ;;  %s85_s11 = smov [#allocation5]   ;;  %v21_v0 = vld [vmem:[#allocation2] sm:$0xf] }
   0xe   :  { %s29_s12 = sshll.u32 %s85_s11, 4  ;;  %22 = vst [vmem:[#allocation5] sm:$0xf] %v21_v0  ;;  %s30_s12 = int_to_ptr.vmem [resolvable:$true] %s29_s12 }
   0xf   :  { %s60_s13 = scalar_lea.vmem %s30_s12, 64  ;;  %p65_p6 = scmp.lt.s32.totalorder %s30_s12, %s30_s12 }
  0x10   :  { %p61_p5 = scmp.ne.s32.totalorder %s30_s12, %s60_s13  ;;  %p66_p7 = scmp.lt.s32.totalorder %s60_s13, %s60_s13 }
  0x12   :  { %p67_p8 = por %p66_p7, %p65_p6 }
  0x14   :  { %p68_p9 = pnand %p67_p8, %p61_p5 }
  0x16   :  { %71 = shalt.err (!%p68_p9)
}
  0x17   :  { %32 = dma.vmem_to_hbm [thread:$0]  %s30_s12, 64, %s103_s1, [#allocation4]  }
  0x18   :  { %82 = dma.done.wait [#allocation4], 64  }
  0x19   :  { %83 = vsyncadd [#allocation4], 4294967232 }
  0x1a   :  { %36 = vsyncpa [#allocation3], 1 }
  0x1b   :  { %37 = vsyncpa [#allocation4], 1 }

</bundles_post_ra>
